<compile_context>
chip_gen: v7x
topology: tpu7x:2x2x1
jax: 0.10.0
libtpu: 0.0.40
codegen_flags: <defaults>
</compile_context>

<pallas_src>
import functools

import jax
import jax.numpy as jnp
from jax.experimental import pallas as pl
from jax.experimental.pallas import tpu as pltpu

NUM_CLASSES = 10          # hard-coded in the PyTorch module (F.one_hot(..., 10))
DEFAULT_TILE_B = 8192     # (10, 8192) f32 tile ~ 320 KiB/buffer; fits v5e/v6e/v7x VMEM


def _round_up(x: int, m: int) -> int:
    return ((x + m - 1) // m) * m


def _ls_ce_kernel(logits_ref, targets_ref, out_ref, *,
                  smoothing: float, num_classes: int,
                  true_b: int, tile_b: int):
    # logits_ref : (C, TILE_B) float (any float dtype; upcast here)
    # targets_ref: (1, TILE_B) int32
    # out_ref    : (1, TILE_B) f32 per-example loss (0 for padded columns)
    x = logits_ref[...].astype(jnp.float32)                             # (C, T)
    t = targets_ref[...]                                                # (1, T)
    c = num_classes

    # log-softmax over the class (sublane) axis.
    m = jnp.max(x, axis=0, keepdims=True)                               # (1, T)
    shifted = x - m                                                     # (C, T)
    lse = jnp.log(jnp.sum(jnp.exp(shifted), axis=0, keepdims=True))     # (1, T)

    # sum_c log_probs = sum_c(shifted) - C * lse   (no (C,T) log_probs temp)
    sum_lp = jnp.sum(shifted, axis=0, keepdims=True) - c * lse          # (1, T)

    # log_prob at the target class via iota-compare select (no one-hot temp).
    class_ids = jax.lax.broadcasted_iota(jnp.int32, x.shape, 0)         # (C, T)
    lp_tgt = jnp.sum(jnp.where(class_ids == t, shifted, 0.0),
                     axis=0, keepdims=True) - lse                       # (1, T)

    confidence = 1.0 - smoothing
    per_example = -(confidence * lp_tgt + (smoothing / c) * sum_lp)     # (1, T)

    # Zero out padded batch columns (only the last tile can contain them).
    col = (pl.program_id(0) * tile_b
           + jax.lax.broadcasted_iota(jnp.int32, (1, tile_b), 1))
    out_ref[...] = jnp.where(col < true_b, per_example, 0.0)


def label_smoothing_cross_entropy(outputs: jax.Array,
                                  targets: jax.Array,
                                  smoothing: float = 0.1,
                                  tile_b: int = DEFAULT_TILE_B) -> jax.Array:
    """outputs: (B, 10) float logits (f32 or bf16), targets: (B,) int class ids."""
    B, C = outputs.shape
    assert C == NUM_CLASSES, "module fixes num_classes=10"

    tile_b = min(tile_b, _round_up(B, 128))
    tile_b = _round_up(tile_b, 128)           # lane dim must be a multiple of 128
    num_blocks = pl.cdiv(B, tile_b)
    b_padded = num_blocks * tile_b

    # Lane-dense layouts: logits (C, B_pad), targets (1, B_pad).
    logits_t = jnp.pad(outputs.T, ((0, 0), (0, b_padded - B)))
    targets_r = jnp.pad(targets.astype(jnp.int32).reshape(1, B),
                        ((0, 0), (0, b_padded - B)))

    kernel = functools.partial(_ls_ce_kernel, smoothing=float(smoothing),
                               num_classes=C, true_b=B, tile_b=tile_b)

    itemsize = jnp.dtype(outputs.dtype).itemsize
    cost = pl.CostEstimate(
        flops=10 * B * C,
        transcendentals=B * C + B,                      # exp per class + one log
        bytes_accessed=B * C * itemsize + B * 4 + b_padded * 4)

    per_example = pl.pallas_call(
        kernel,
        out_shape=jax.ShapeDtypeStruct((1, b_padded), jnp.float32),
        grid=(num_blocks,),
        in_specs=[
            pl.BlockSpec((C, tile_b), lambda i: (0, i)),   # logits (sublane=C)
            pl.BlockSpec((1, tile_b), lambda i: (0, i)),   # targets (lane-dense)
        ],
        out_specs=pl.BlockSpec((1, tile_b), lambda i: (0, i)),
        compiler_params=pltpu.CompilerParams(
            dimension_semantics=("parallel",)),
        cost_estimate=cost,
    )(logits_t, targets_r)

    # Padded columns were zeroed in-kernel; divide by the true batch size.
    return jnp.sum(per_example) / B


def _reference(outputs, targets, smoothing=0.1):
    log_probs = jax.nn.log_softmax(outputs.astype(jnp.float32), axis=-1)
    one_hot = jax.nn.one_hot(targets, NUM_CLASSES, dtype=jnp.float32)
    smoothed = one_hot * (1.0 - smoothing) + smoothing / NUM_CLASSES
    return jnp.mean(jnp.sum(-smoothed * log_probs, axis=1))


if __name__ == "__main__":
    key = jax.random.PRNGKey(0)
    k1, k2, k3, k4 = jax.random.split(key, 4)

    # Small shapes consistent with the module: (batch, 10) logits + int targets.
    batch = 8
    outputs = jax.random.normal(k1, (batch, NUM_CLASSES), dtype=jnp.float32)
    targets = jax.random.randint(k2, (batch,), 0, NUM_CLASSES, dtype=jnp.int32)

    loss = jax.block_until_ready(
        label_smoothing_cross_entropy(outputs, targets, smoothing=0.1))
    ref = _reference(outputs, targets, smoothing=0.1)
    assert jnp.allclose(loss, ref, atol=1e-5, rtol=1e-5), (loss, ref)

    # Exercise the multi-tile grid + padding mask (3 blocks, last one partial).
    batch2 = 300
    outputs2 = jax.random.normal(k3, (batch2, NUM_CLASSES), dtype=jnp.float32)
    targets2 = jax.random.randint(k4, (batch2,), 0, NUM_CLASSES, dtype=jnp.int32)
    loss2 = jax.block_until_ready(
        label_smoothing_cross_entropy(outputs2, targets2, smoothing=0.1,
                                      tile_b=128))
    ref2 = _reference(outputs2, targets2, smoothing=0.1)
    assert jnp.allclose(loss2, ref2, atol=1e-5, rtol=1e-5), (loss2, ref2)

    print("KERNEL_OK")
</pallas_src>

<mosaic_0001>
module attributes {stable_mosaic.version = 11 : i64} {
  func.func @_ls_ce_kernel(%arg0: i32, %arg1: memref<10x128xf32, #tpu.memory_space<vmem>>, %arg2: memref<1x128xi32, #tpu.memory_space<vmem>>, %arg3: memref<1x128xf32, #tpu.memory_space<vmem>>) attributes {dimension_semantics = [#tpu.dimension_semantics<parallel>], iteration_bounds = array<i64: 1>, scalar_prefetch = 0 : i64, scratch_operands = 0 : i64, tpu.core_type = #tpu.core_type<tc>, window_params = [{transform_indices = @transform_0, window_bounds = array<i64: 10, 128>}, {transform_indices = @transform_1, window_bounds = array<i64: 1, 128>}, {transform_indices = @transform_2, window_bounds = array<i64: 1, 128>}]} {
    %c0 = arith.constant 0 : index
    %c0_0 = arith.constant 0 : index
    %0 = vector.load %arg1[%c0, %c0_0] : memref<10x128xf32, #tpu.memory_space<vmem>>, vector<10x128xf32>
    %c0_1 = arith.constant 0 : index
    %c0_2 = arith.constant 0 : index
    %1 = vector.load %arg2[%c0_1, %c0_2] : memref<1x128xi32, #tpu.memory_space<vmem>>, vector<1x128xi32>
    %cst = arith.constant dense<0xFF800000> : vector<128xf32>
    %2 = vector.multi_reduction <maximumf>, %0, %cst [0] : vector<10x128xf32> to vector<128xf32>
    %3 = vector.shape_cast %2 : vector<128xf32> to vector<1x128xf32>
    %4 = vector.broadcast %3 : vector<1x128xf32> to vector<10x128xf32>
    %5 = arith.subf %0, %4 : vector<10x128xf32>
    %6 = math.exp %5 : vector<10x128xf32>
    %cst_3 = arith.constant dense<0.000000e+00> : vector<128xf32>
    %7 = vector.multi_reduction <add>, %6, %cst_3 [0] : vector<10x128xf32> to vector<128xf32>
    %8 = vector.shape_cast %7 : vector<128xf32> to vector<1x128xf32>
    %9 = math.log %8 : vector<1x128xf32>
    %cst_4 = arith.constant dense<0.000000e+00> : vector<128xf32>
    %10 = vector.multi_reduction <add>, %5, %cst_4 [0] : vector<10x128xf32> to vector<128xf32>
    %11 = vector.shape_cast %10 : vector<128xf32> to vector<1x128xf32>
    %cst_5 = arith.constant 1.000000e+01 : f32
    %12 = vector.broadcast %cst_5 : f32 to vector<1x128xf32>
    %13 = arith.mulf %12, %9 : vector<1x128xf32>
    %14 = arith.subf %11, %13 : vector<1x128xf32>
    %15 = tpu.iota {dimensions = array<i32: 0>} : vector<10x128xi32>
    %16 = vector.broadcast %1 : vector<1x128xi32> to vector<10x128xi32>
    %17 = arith.cmpi eq, %15, %16 : vector<10x128xi32>
    %cst_6 = arith.constant 0.000000e+00 : f32
    %18 = vector.broadcast %cst_6 : f32 to vector<10x128xf32>
    %19 = arith.select %17, %5, %18 : vector<10x128xi1>, vector<10x128xf32>
    %cst_7 = arith.constant dense<0.000000e+00> : vector<128xf32>
    %20 = vector.multi_reduction <add>, %19, %cst_7 [0] : vector<10x128xf32> to vector<128xf32>
    %21 = vector.shape_cast %20 : vector<128xf32> to vector<1x128xf32>
    %22 = arith.subf %21, %9 : vector<1x128xf32>
    %cst_8 = arith.constant 0.899999976 : f32
    %23 = vector.broadcast %cst_8 : f32 to vector<1x128xf32>
    %24 = arith.mulf %23, %22 : vector<1x128xf32>
    %cst_9 = arith.constant 0.00999999977 : f32
    %25 = vector.broadcast %cst_9 : f32 to vector<1x128xf32>
    %26 = arith.mulf %25, %14 : vector<1x128xf32>
    %27 = arith.addf %24, %26 : vector<1x128xf32>
    %cst_10 = arith.constant 0.000000e+00 : f32
    %28 = vector.broadcast %cst_10 : f32 to vector<1x128xf32>
    %29 = arith.subf %28, %27 : vector<1x128xf32>
    %c128_i32 = arith.constant 128 : i32
    %30 = arith.muli %arg0, %c128_i32 : i32
    %31 = tpu.iota {dimensions = array<i32: 1>} : vector<1x128xi32>
    %32 = vector.broadcast %30 : i32 to vector<1x128xi32>
    %33 = arith.addi %32, %31 : vector<1x128xi32>
    %c8_i32 = arith.constant 8 : i32
    %34 = vector.broadcast %c8_i32 : i32 to vector<1x128xi32>
    %35 = arith.cmpi slt, %33, %34 : vector<1x128xi32>
    %cst_11 = arith.constant 0.000000e+00 : f32
    %36 = vector.broadcast %cst_11 : f32 to vector<1x128xf32>
    %37 = arith.select %35, %29, %36 : vector<1x128xi1>, vector<1x128xf32>
    %c0_12 = arith.constant 0 : index
    %c0_13 = arith.constant 0 : index
    %38 = vector.load %arg3[%c0_12, %c0_13] : memref<1x128xf32, #tpu.memory_space<vmem>>, vector<1x128xf32>
    tpu.vector_store %arg3[%c0_12, %c0_13], %37 {strides = array<i32>} : memref<1x128xf32, #tpu.memory_space<vmem>>, vector<1x128xf32>,
    return
  }
  func.func @transform_0(%arg0: i32) -> (i32, i32) {
    %c0_i32 = arith.constant 0 : i32
    %c0_i32_0 = arith.constant 0 : i32
    return %c0_i32, %arg0 : i32, i32
  }
  func.func @transform_1(%arg0: i32) -> (i32, i32) {
    %c0_i32 = arith.constant 0 : i32
    %c0_i32_0 = arith.constant 0 : i32
    return %c0_i32, %arg0 : i32, i32
  }
  func.func @transform_2(%arg0: i32) -> (i32, i32) {
    %c0_i32 = arith.constant 0 : i32
    %c0_i32_0 = arith.constant 0 : i32
    return %c0_i32, %arg0 : i32, i32
  }
}

</mosaic_0001>

<bundles_post_ra>
// kernel: tpu_custom_call.1
= control target key start
LH: loop header
LB: loop body
LE: loop exit
PB: predicated region body
PF: predicated region fallthrough
CT: control target
= control target key end

     0   :  { %7 = vsyncpa [#allocation3], 0  ;;  %s220_s0 = inlined_call_operand.hbm [shape: f32[10,128], index: 0, kind: input, shape index: {}]   ;;  %s221_s1 = inlined_call_operand.vmem [shape: s32[1,128], index: 1, kind: input, shape index: {}]   ;;  %s222_s2 = inlined_call_operand.hbm [shape: f32[1,128], index: 2, kind: output, shape index: {}]  }
   0x1   :  { %8 = vsyncpa [#allocation4], 0  ;;  %s170_s9 = smov [#allocation2]   ;;  %s122_s13 = scalar_lea.hbm %s220_s0, 256 }
   0x2   :  { %s14_s10 = sshll.u32 %s170_s9, 4  ;;  %p123_p0 = scmp.ne.s32.totalorder %s220_s0, %s122_s13  ;;  %s15_s10 = int_to_ptr.vmem [resolvable:$true] %s14_s10 }
   0x3   :  { %p126_p1 = scmp.lt.u32.totalorder %s122_s13, %s220_s0 }
   0x5   :  { %p128_p2 = pnand %p126_p1, %p123_p0 }
   0x7   :  { %131 = shalt.err (!%p128_p2)
}
   0x8   :  { %s132_s18 = scalar_lea.vmem %s15_s10, 256  ;;  %p137_p4 = scmp.lt.s32.totalorder %s15_s10, %s15_s10 }
   0x9   :  { %p133_p3 = scmp.ne.s32.totalorder %s15_s10, %s132_s18  ;;  %p138_p5 = scmp.lt.s32.totalorder %s132_s18, %s132_s18 }
   0xb   :  { %p139_p6 = por %p138_p5, %p137_p4 }
   0xd   :  { %p140_p7 = pnand %p139_p6, %p133_p3 }
   0xf   :  { %143 = shalt.err (!%p140_p7)
}
  0x10   :  { %s171_s19 = smov 128   ;;  %s172_s20 = smov 8  }
  0x11   :  { %20 = dma.hbm_to_vmem [thread:$0]  %s220_s0, 256, %s15_s10, [#allocation3], %s171_s19, %s171_s19, %s172_s20  }
  0x12   :  { %166 = dma.done.wait [#allocation3], 256  }
  0x13   :  { %167 = vsyncadd [#allocation3], 4294967040  ;;  %vm29_vm0 = vcmask 1041408   ;;  %v26_v0 = vld [vmem:[#allocation2] sm:$0xff]  ;;  %v27_v1 = vld [vmem:[#allocation2 + $0x8] sm:$0x3]  ;;  %v64_v8 = vlaneseq }
  0x14   :  { %v30_v2 = vsel %vm29_vm0, %v27_v1, -inf  ;;  %v111_v17 = vld [vmem:[%s221_s1] ss:$0 sm:$0xff]  ;;  %s173_s1 = smov [#allocation5]  }
  0x15   :  { %v31_v3 = vmax.f32 %v26_v0, %v30_v2  ;;  %v65_v11 = vshrl.u32 %v64_v8, 7  ;;  %v90_v52 = vand.u32 127, %v64_v8  ;;  %s102_s24 = sshll.u32 %s173_s1, 4  ;;  %s103_s24 = int_to_ptr.vmem [resolvable:$true] %s102_s24 }
  0x16   :  { %s144_s25 = scalar_lea.vmem %s103_s24, 16  ;;  %s148_s26 = scalar_lea.vmem %s103_s24, 32 }
  0x17   :  { %v32_v4 = vrot.slane %v31_v3, 4  ;;  %v66_v16 = vadd.s32 8, %v65_v11  ;;  %vm71_vm2 = vcmp.eq.s32.totalorder %v65_v11, %v111_v17  ;;  %vm93_vm3 = vcmp.lt.s32.totalorder %v90_v52, 8  ;;  %p145_p8 = scmp.ne.s32.totalorder %s103_s24, %s144_s25  ;;  %p149_p9 = scmp.lt.s32.totalorder %s103_s24, %s103_s24 }
  0x18   :  { %p150_p10 = scmp.lt.s32.totalorder %s148_s26, %s144_s25 }
  0x19   :  { %v33_v5 = vmax.f32 %v31_v3, %v32_v4  ;;  %vm72_vm1 = vcmp.eq.s32.totalorder %v66_v16, %v111_v17 }
  0x1a   :  { %p151_p11 = por %p150_p10, %p149_p9 }
  0x1b   :  { %v34_v6 = vrot.slane %v33_v5, 2 }
  0x1c   :  { %p152_p12 = pnand %p151_p11, %p145_p8 }
  0x1d   :  { %v35_v7 = vmax.f32 %v33_v5, %v34_v6 }
  0x1f   :  { %v36_v9 = vrot.slane %v35_v7, 1 }
  0x21   :  { %v37_v10 = vmax.f32 %v35_v7, %v36_v9 }
  0x23   :  { %v38_v12 = vsub.f32 %v26_v0, %v37_v10  ;;  %v39_v13 = vsub.f32 %v27_v1, %v37_v10 }
  0x25   :  { %v40_v14 = vmul.f32 1.442695, %v38_v12  ;;  %v42_v15 = vmul.f32 1.442695, %v39_v13  ;;  %v74_v18 = vsel %vm72_vm1, %v39_v13, 0.0  ;;  %v73_v19 = vsel %vm71_vm2, %v38_v12, 0.0 }
  0x26   :  { %v75_v20 = vsel %vm29_vm0, %v74_v18, 0.0  ;;  %v54_v23 = vsel %vm29_vm0, %v39_v13, 0.0 }
  0x27   :  { %116 = vpow2.f32 %v40_v14  ;;  %v76_v25 = vadd.f32 %v75_v20, %v73_v19  ;;  %v55_v27 = vadd.f32 %v54_v23, %v38_v12 }
  0x28   :  { %118 = vpow2.f32 %v42_v15 }
  0x29   :  { %v77_v29 = vrot.slane %v76_v25, 4  ;;  %v56_v31 = vrot.slane %v55_v27, 4 }
  0x2b   :  { %v78_v33 = vadd.f32 %v77_v29, %v76_v25  ;;  %v57_v35 = vadd.f32 %v56_v31, %v55_v27 }
  0x2d   :  { %v79_v37 = vrot.slane %v78_v33, 2  ;;  %v58_v39 = vrot.slane %v57_v35, 2 }
  0x2f   :  { %v80_v40 = vadd.f32 %v79_v37, %v78_v33  ;;  %v59_v41 = vadd.f32 %v58_v39, %v57_v35 }
  0x31   :  { %v117_v21 = vpop.eup %116  ;;  %v81_v42 = vrot.slane %v80_v40, 1  ;;  %v60_v43 = vrot.slane %v59_v41, 1 }
  0x32   :  { %v119_v22 = vpop.eup %118 }
  0x33   :  { %v44_v24 = vsel %vm29_vm0, %v119_v22, 0.0  ;;  %v82_v44 = vadd.f32 %v81_v42, %v80_v40  ;;  %v61_v47 = vadd.f32 %v60_v43, %v59_v41 }
  0x34   :  { %v45_v26 = vadd.f32 %v117_v21, %v44_v24 }
  0x36   :  { %v46_v28 = vrot.slane %v45_v26, 4 }
  0x38   :  { %v47_v30 = vadd.f32 %v46_v28, %v45_v26 }
  0x3a   :  { %v48_v32 = vrot.slane %v47_v30, 2 }
  0x3c   :  { %v49_v34 = vadd.f32 %v48_v32, %v47_v30 }
  0x3e   :  { %v50_v36 = vrot.slane %v49_v34, 1 }
  0x40   :  { %v51_v38 = vadd.f32 %v50_v36, %v49_v34 }
  0x42   :  { %120 = vlog2.f32 %v51_v38 }
  0x4c   :  { %v121_v45 = vpop.eup %120 }
  0x4d   :  { %v53_v46 = vmul.f32 0.6931472, %v121_v45 }
  0x4f   :  { %v62_v48 = vmul.f32 10.0, %v53_v46  ;;  %v83_v49 = vsub.f32 %v82_v44, %v53_v46 }
  0x51   :  { %v63_v50 = vsub.f32 %v61_v47, %v62_v48  ;;  %v84_v51 = vmul.f32 0.9, %v83_v49 }
  0x53   :  { %v85_v53 = vmul.f32 0.01, %v63_v50 }
  0x55   :  { %v86_v54 = vadd.f32 %v85_v53, %v84_v51 }
  0x57   :  { %v87_v55 = vsub.f32 0.0, %v86_v54 }
  0x59   :  { %v94_v56 = vsel %vm93_vm3, %v87_v55, 0.0 }
  0x5a   :  { %95 = vst [vmem:[#allocation5] sm:$0x1] %v94_v56 }
  0x5b   :  { %155 = shalt.err (!%p152_p12)
}
  0x5c   :  { %s156_s29 = scalar_lea.hbm %s222_s2, 16 }
  0x5d   :  { %p157_p13 = scmp.ne.s32.totalorder %s222_s2, %s156_s29  ;;  %p160_p0 = scmp.lt.u32.totalorder %s156_s29, %s222_s2 }
  0x5f   :  { %p162_p1 = pnand %p160_p0, %p157_p13 }
  0x61   :  { %165 = shalt.err (!%p162_p1)
}
  0x62   :  { %105 = dma.vmem_to_hbm [thread:$0]  %s103_s24, 16, %s222_s2, [#allocation4]  }
  0x63   :  { %168 = dma.done.wait [#allocation4], 16  }
  0x64   :  { %169 = vsyncadd [#allocation4], 4294967280 }
  0x65   :  { %109 = vsyncpa [#allocation3], 1 }
  0x66   :  { %110 = vsyncpa [#allocation4], 1 }

</bundles_post_ra>
